<compile_context>
chip_gen: v7x
topology: tpu7x:2x2x1
jax: 0.10.0
libtpu: 0.0.40
codegen_flags: <defaults>
</compile_context>

<pallas_src>
import functools

import jax
import jax.numpy as jnp
from jax import lax
from jax.experimental import pallas as pl
from jax.experimental.pallas import tpu as pltpu


D_DDRB = (1, 1, 2, 2, 5, 5)
D_ERPAB = (1, 2, 5)

# f32 keeps the <1e-3 check against the f32 lax.conv reference exact;
# set to jnp.bfloat16 on v6e / v7x for higher MXU throughput.
MATMUL_DTYPE = jnp.float32


# ---------------------------------------------------------------------------
# In-kernel helpers
# ---------------------------------------------------------------------------

@functools.lru_cache(maxsize=None)
def _roll_sign():
    """One-time probe of pltpu.roll's rotation direction (expected to match
    jnp.roll: result[i] = x[i - shift]); keeps the conv tap shifts correct."""
    def probe(x_ref, o_ref):
        o_ref[...] = pltpu.roll(x_ref[...], shift=1, axis=1)

    x = jnp.broadcast_to(jnp.arange(128, dtype=jnp.float32)[None, :], (8, 128))
    y = pl.pallas_call(
        probe, out_shape=jax.ShapeDtypeStruct((8, 128), jnp.float32))(x)
    return 1 if float(y[0, 1]) == 0.0 else -1


def _conv3x3(x, w_flat, dil, *, col_ref, yy, xx, H, W, nhw, relu):
    """3x3 dilated conv (stride 1, 'same' zero padding) on a (Cin, N*H*W) slab.

    x:      (Cin, nhw) f32 value (batch folded into the lane axis)
    w_flat: (Cout, 9*Cin) value, tap-major: w_flat[:, t*Cin:(t+1)*Cin] is the
            OIHW tap w[:, :, kh, kw] with t = kh*3 + kw.
    Builds a (9*Cin, nhw) im2col slab in col_ref from lane-rotated + masked
    copies of x, then performs a single K = 9*Cin MXU matmul.
    """
    cin = x.shape[0]
    sign = _roll_sign()
    for kh in range(3):
        for kw in range(3):
            dy, dx = (kh - 1) * dil, (kw - 1) * dil
            tap = kh * 3 + kw
            if dy == 0 and dx == 0:
                col_ref[tap * cin:(tap + 1) * cin, :] = x
                continue
            s = dy * W + dx
            shifted = pltpu.roll(x, shift=(-s * sign) % nhw, axis=1)
            conds = []
            if dy > 0:
                conds.append(yy < H - dy)
            elif dy < 0:
                conds.append(yy >= -dy)
            if dx > 0:
                conds.append(xx < W - dx)
            elif dx < 0:
                conds.append(xx >= -dx)
            m = conds[0]
            for cnd in conds[1:]:
                m = m & cnd
            col_ref[tap * cin:(tap + 1) * cin, :] = shifted * m.astype(x.dtype)
    acc = jnp.dot(w_flat.astype(MATMUL_DTYPE),
                  col_ref[0:9 * cin, :].astype(MATMUL_DTYPE),
                  preferred_element_type=jnp.float32)
    return jnp.maximum(acc, 0.0) if relu else acc


def _spatial_index(nhw, H, W):
    pos = lax.broadcasted_iota(jnp.int32, (1, nhw), 1)
    return (pos // W) % H, pos % W


# ---------------------------------------------------------------------------
# Fused block kernels
# ---------------------------------------------------------------------------

def _ddrb_kernel(x_ref, w_ref, o_ref, col_ref, *, H, W, nhw, d):
    """Whole DDRB fused: 6 dilated 3x3 convs + 3 residual ReLU sums in VMEM."""
    yy, xx = _spatial_index(nhw, H, W)
    conv = functools.partial(_conv3x3, col_ref=col_ref, yy=yy, xx=xx,
                             H=H, W=W, nhw=nhw)

    x = x_ref[...]
    x1 = conv(conv(x, w_ref[0], d[0], relu=True), w_ref[1], d[1], relu=False)
    s1 = jnp.maximum(x + x1, 0.0)
    x2 = conv(conv(s1, w_ref[2], d[2], relu=True), w_ref[3], d[3], relu=False)
    s2 = jnp.maximum(x + x1 + x2, 0.0)
    x3 = conv(conv(s2, w_ref[4], d[4], relu=True), w_ref[5], d[5], relu=False)
    o_ref[...] = jnp.maximum(x + x1 + x2 + x3, 0.0)


def _erpab_kernel(x_ref, w3_ref, wout_ref, bout_ref, wpa1_ref, wpa2_ref,
                  o_ref, col_ref, *, H, W, nhw, d):
    """Whole ERPAB fused: 3 dilated convs, 1x1 fuse conv (+bias, ReLU),
    pixel-attention (3x3 -> ReLU -> 3x3 -> sigmoid) and residual gate."""
    yy, xx = _spatial_index(nhw, H, W)
    conv = functools.partial(_conv3x3, col_ref=col_ref, yy=yy, xx=xx,
                             H=H, W=W, nhw=nhw)

    x = x_ref[...]
    b0 = conv(x, w3_ref[0], d[0], relu=False)
    b1 = conv(x, w3_ref[1], d[1], relu=False)
    b2 = conv(x, w3_ref[2], d[2], relu=False)
    # outconv over the channel-concat (weight pre-split per branch) + bias + ReLU
    y = (jnp.dot(wout_ref[0], b0, preferred_element_type=jnp.float32) +
         jnp.dot(wout_ref[1], b1, preferred_element_type=jnp.float32) +
         jnp.dot(wout_ref[2], b2, preferred_element_type=jnp.float32) +
         bout_ref[...])
    y = jnp.maximum(y, 0.0)
    # pixel attention: 3x3 (C->1) + ReLU, 3x3 (1->C), sigmoid
    p = conv(y, wpa1_ref[...], 1, relu=True)
    res = jax.nn.sigmoid(conv(p, wpa2_ref[...], 1, relu=False))
    o_ref[...] = jnp.maximum(y * res + x, 0.0)


def _head_kernel(x_ref, w_ref, o_ref):
    # inconv1: 1x1 conv + ReLU
    o_ref[...] = jnp.maximum(
        jnp.dot(w_ref[...], x_ref[...], preferred_element_type=jnp.float32),
        0.0)


def _mid_kernel(h_ref, xin_ref, wout1_ref, win2_ref, xmid_ref, z_ref):
    # x_mid = relu(outconv1(h)) + input ; z = relu(inconv2(relu(x_mid)))
    xm = jnp.maximum(
        jnp.dot(wout1_ref[...], h_ref[...], preferred_element_type=jnp.float32),
        0.0) + xin_ref[...]
    xmid_ref[...] = xm
    z_ref[...] = jnp.maximum(
        jnp.dot(win2_ref[...], jnp.maximum(xm, 0.0),
                preferred_element_type=jnp.float32), 0.0)


def _tail_kernel(h_ref, xmid_ref, wout2_ref, o_ref):
    # out = relu(outconv2(h)) + x_mid
    o_ref[...] = jnp.maximum(
        jnp.dot(wout2_ref[...], h_ref[...], preferred_element_type=jnp.float32),
        0.0) + xmid_ref[...]


# ---------------------------------------------------------------------------
# pallas_call wrappers
# ---------------------------------------------------------------------------

def _ddrb_block(x_cm, w_stack, H, W):
    c, nhw = x_cm.shape
    kern = functools.partial(_ddrb_kernel, H=H, W=W, nhw=nhw, d=D_DDRB)
    flops = 2 * 6 * 9 * c * c * nhw
    return pl.pallas_call(
        kern,
        out_shape=jax.ShapeDtypeStruct((c, nhw), jnp.float32),
        scratch_shapes=[pltpu.VMEM((9 * c, nhw), jnp.float32)],
        cost_estimate=pl.CostEstimate(
            flops=flops, transcendentals=0,
            bytes_accessed=4 * (2 * c * nhw + w_stack.size)),
    )(x_cm, w_stack)


def _erpab_block(x_cm, p, H, W):
    c, nhw = x_cm.shape
    kern = functools.partial(_erpab_kernel, H=H, W=W, nhw=nhw, d=D_ERPAB)
    flops = 2 * nhw * (3 * 9 * c * c + 3 * c * c + 9 * c + 9 * c)
    w_bytes = 4 * (p["w3"].size + p["wout"].size + p["bout"].size +
                   p["wpa1"].size + p["wpa2"].size)
    return pl.pallas_call(
        kern,
        out_shape=jax.ShapeDtypeStruct((c, nhw), jnp.float32),
        scratch_shapes=[pltpu.VMEM((9 * c, nhw), jnp.float32)],
        cost_estimate=pl.CostEstimate(
            flops=flops, transcendentals=c * nhw,
            bytes_accessed=4 * 2 * c * nhw + w_bytes),
    )(x_cm, p["w3"], p["wout"], p["bout"], p["wpa1"], p["wpa2"])


def _head(x_cm, w):
    return pl.pallas_call(
        _head_kernel,
        out_shape=jax.ShapeDtypeStruct((w.shape[0], x_cm.shape[1]),
                                       jnp.float32),
    )(x_cm, w)


def _mid(h_cm, xin_cm, wout1, win2):
    nhw = h_cm.shape[1]
    return pl.pallas_call(
        _mid_kernel,
        out_shape=(jax.ShapeDtypeStruct((wout1.shape[0], nhw), jnp.float32),
                   jax.ShapeDtypeStruct((win2.shape[0], nhw), jnp.float32)),
    )(h_cm, xin_cm, wout1, win2)


def _tail(h_cm, xmid_cm, wout2):
    nhw = h_cm.shape[1]
    return pl.pallas_call(
        _tail_kernel,
        out_shape=jax.ShapeDtypeStruct((wout2.shape[0], nhw), jnp.float32),
    )(h_cm, xmid_cm, wout2)


# ---------------------------------------------------------------------------
# Parameters (PyTorch OIHW) and one-time conversion to kernel layout
# ---------------------------------------------------------------------------

def _flatten_3x3(w_oihw):
    # (Cout, Cin, 3, 3) -> (Cout, 9*Cin), tap-major (kh*3 + kw)
    o, i, kh, kw = w_oihw.shape
    return jnp.transpose(w_oihw, (0, 2, 3, 1)).reshape(o, kh * kw * i)


def init_params(key, in_channels=3, mid_channels=32, n_ddrb=5, n_erpab=3,
                reduction=32):
    """Deterministic synthetic weights (kaiming-uniform-like bound), OIHW."""
    n_keys = 4 + 6 * n_ddrb + 7 * n_erpab
    keys = iter(jax.random.split(key, n_keys))

    def make(shape):
        fan_in = 1
        for s in shape[1:]:
            fan_in *= s
        bound = (1.0 / fan_in) ** 0.5
        return jax.random.uniform(next(keys), shape, jnp.float32, -bound, bound)

    m, c = mid_channels, in_channels
    return {
        "inconv1": make((m, c, 1, 1)),
        "inconv2": make((m, c, 1, 1)),
        "outconv1": make((c, m, 1, 1)),
        "outconv2": make((c, m, 1, 1)),
        "ddrb": [[make((m, m, 3, 3)) for _ in range(6)] for _ in range(n_ddrb)],
        "erpab": [{
            "w1": make((m, m, 3, 3)),
            "w2": make((m, m, 3, 3)),
            "w3": make((m, m, 3, 3)),
            "wout": make((m, 3 * m, 1, 1)),
            "bout": make((m,)),
            "wpa1": make((m // reduction, m, 3, 3)),
            "wpa2": make((m, m // reduction, 3, 3)),
        } for _ in range(n_erpab)],
    }


def prepare_params(params):
    """Convert OIHW weights once (outside the jitted forward):
    1x1 convs -> (Cout, Cin); 3x3 convs -> tap-major (Cout, 9*Cin) stacks."""
    sq = lambda w: w.reshape(w.shape[0], w.shape[1])

    def erpab(e):
        wout = sq(e["wout"])                    # (m, 3m)
        b = wout.shape[1] // 3
        return {
            "w3": jnp.stack([_flatten_3x3(e["w1"]), _flatten_3x3(e["w2"]),
                             _flatten_3x3(e["w3"])]),
            "wout": jnp.stack([wout[:, 0:b], wout[:, b:2 * b],
                               wout[:, 2 * b:3 * b]]),
            "bout": e["bout"].reshape(-1, 1),
            "wpa1": _flatten_3x3(e["wpa1"]),
            "wpa2": _flatten_3x3(e["wpa2"]),
        }

    return {
        "inconv1": sq(params["inconv1"]),
        "inconv2": sq(params["inconv2"]),
        "outconv1": sq(params["outconv1"]),
        "outconv2": sq(params["outconv2"]),
        "ddrb": [jnp.stack([_flatten_3x3(w) for w in ws])
                 for ws in params["ddrb"]],
        "erpab": [erpab(e) for e in params["erpab"]],
    }


# ---------------------------------------------------------------------------
# Full LightDPENet forward (Pallas)
# ---------------------------------------------------------------------------

@jax.jit
def lightdpenet_forward(x_nchw, prep):
    """x_nchw: (N, 3, H, W) f32.  Returns (x_mid, out), both (N, 3, H, W)."""
    n, c_in, h, w = x_nchw.shape
    nhw = n * h * w
    x_cm = jnp.transpose(x_nchw, (1, 0, 2, 3)).reshape(c_in, nhw)

    z = _head(x_cm, prep["inconv1"])                       # inconv1 + ReLU
    for w_stack in prep["ddrb"]:                           # 5 fused DDRBs
        z = _ddrb_block(z, w_stack, h, w)
    xmid_cm, z = _mid(z, x_cm, prep["outconv1"], prep["inconv2"])
    for ep in prep["erpab"]:                               # 3 fused ERPABs
        z = _erpab_block(z, ep, h, w)
    out_cm = _tail(z, xmid_cm, prep["outconv2"])

    def unflat(a):
        return jnp.transpose(a.reshape(a.shape[0], n, h, w), (1, 0, 2, 3))

    return unflat(xmid_cm), unflat(out_cm)


# ---------------------------------------------------------------------------
# Pure-JAX (lax.conv) reference for correctness checking
# ---------------------------------------------------------------------------

def _rconv(x, w, dil=1, pad=None, bias=None):
    if pad is None:
        pad = dil
    out = lax.conv_general_dilated(
        x, w, window_strides=(1, 1), padding=[(pad, pad), (pad, pad)],
        rhs_dilation=(dil, dil), dimension_numbers=("NCHW", "OIHW", "NCHW"))
    if bias is not None:
        out = out + bias.reshape(1, -1, 1, 1)
    return out


def _ddrb_ref(x, ws, d):
    x1 = _rconv(jax.nn.relu(_rconv(x, ws[0], d[0])), ws[1], d[1])
    s1 = jax.nn.relu(x + x1)
    x2 = _rconv(jax.nn.relu(_rconv(s1, ws[2], d[2])), ws[3], d[3])
    s2 = jax.nn.relu(x + x1 + x2)
    x3 = _rconv(jax.nn.relu(_rconv(s2, ws[4], d[4])), ws[5], d[5])
    return jax.nn.relu(x + x1 + x2 + x3)


def _erpab_ref(x, p, d):
    x0 = _rconv(x, p["w1"], d[0])
    x1 = _rconv(x, p["w2"], d[1])
    x2 = _rconv(x, p["w3"], d[2])
    cat = jnp.concatenate([x0, x1, x2], axis=1)
    y = jax.nn.relu(_rconv(cat, p["wout"], dil=1, pad=0, bias=p["bout"]))
    r = jax.nn.sigmoid(_rconv(jax.nn.relu(_rconv(y, p["wpa1"], 1, 1)),
                              p["wpa2"], 1, 1))
    return jax.nn.relu(y * r + x)


def lightdpenet_reference(x, params):
    inp = x
    h = jax.nn.relu(_rconv(x, params["inconv1"], dil=1, pad=0))
    for ws in params["ddrb"]:
        h = _ddrb_ref(h, ws, D_DDRB)
    h = jax.nn.relu(_rconv(h, params["outconv1"], dil=1, pad=0))
    x_mid = h + inp
    h = jax.nn.relu(_rconv(jax.nn.relu(x_mid), params["inconv2"], dil=1, pad=0))
    for ep in params["erpab"]:
        h = _erpab_ref(h, ep, D_ERPAB)
    h = jax.nn.relu(_rconv(h, params["outconv2"], dil=1, pad=0))
    return x_mid, h + x_mid


# ---------------------------------------------------------------------------

if __name__ == "__main__":
    key = jax.random.PRNGKey(0)
    k_x, k_p = jax.random.split(key)

    N, C, H, W = 2, 3, 16, 16
    x = jax.random.normal(k_x, (N, C, H, W), jnp.float32)
    params = init_params(k_p, in_channels=C, mid_channels=32,
                         n_ddrb=5, n_erpab=3)
    prep = prepare_params(params)

    _roll_sign()  # warm the one-time rotate-direction probe

    x_mid, out = lightdpenet_forward(x, prep)
    x_mid, out = jax.block_until_ready((x_mid, out))

    ref_mid, ref_out = jax.block_until_ready(lightdpenet_reference(x, params))

    assert x_mid.shape == (N, C, H, W) and out.shape == (N, C, H, W)
    err_mid = float(jnp.max(jnp.abs(x_mid - ref_mid)))
    err_out = float(jnp.max(jnp.abs(out - ref_out)))
    assert err_mid < 1e-3 and err_out < 1e-3, (err_mid, err_out)

    print("KERNEL_OK")
</pallas_src>

<mosaic_0001>
module attributes {stable_mosaic.version = 11 : i64} {
  func.func @probe(%arg0: memref<8x128xf32, #tpu.memory_space<vmem>>, %arg1: memref<8x128xf32, #tpu.memory_space<vmem>>) attributes {dimension_semantics = [], scalar_prefetch = 0 : i64, scratch_operands = 0 : i64, tpu.core_type = #tpu.core_type<tc>} {
    %c0 = arith.constant 0 : index
    %c0_0 = arith.constant 0 : index
    %0 = vector.load %arg0[%c0, %c0_0] : memref<8x128xf32, #tpu.memory_space<vmem>>, vector<8x128xf32>
    %c1_i32 = arith.constant 1 : i32
    %1 = tpu.dynamic_rotate %0 by %c1_i32 dim 1 : vector<8x128xf32>, i32 -> vector<8x128xf32>
    %c0_1 = arith.constant 0 : index
    %c0_2 = arith.constant 0 : index
    %2 = vector.load %arg1[%c0_1, %c0_2] : memref<8x128xf32, #tpu.memory_space<vmem>>, vector<8x128xf32>
    tpu.vector_store %arg1[%c0_1, %c0_2], %1 {strides = array<i32>} : memref<8x128xf32, #tpu.memory_space<vmem>>, vector<8x128xf32>,
    return
  }
}

</mosaic_0001>

<bundles_post_ra>
// kernel: tpu_custom_call.1
= control target key start
LH: loop header
LB: loop body
LE: loop exit
PB: predicated region body
PF: predicated region fallthrough
CT: control target
= control target key end

     0   :  { %6 = vsyncpa [#allocation3], 0  ;;  %s128_s0 = inlined_call_operand.hbm [shape: f32[8,128], index: 0, kind: input, shape index: {}]   ;;  %s129_s1 = inlined_call_operand.hbm [shape: f32[8,128], index: 1, kind: output, shape index: {}]  }
   0x1   :  { %7 = vsyncpa [#allocation4], 0  ;;  %s91_s6 = smov [#allocation2]   ;;  %s43_s10 = scalar_lea.hbm %s128_s0, 128 }
   0x2   :  { %s14_s7 = sshll.u32 %s91_s6, 4  ;;  %p44_p0 = scmp.ne.s32.totalorder %s128_s0, %s43_s10  ;;  %s15_s7 = int_to_ptr.vmem [resolvable:$true] %s14_s7 }
   0x3   :  { %p47_p1 = scmp.lt.u32.totalorder %s43_s10, %s128_s0 }
   0x5   :  { %p49_p2 = pnand %p47_p1, %p44_p0 }
   0x7   :  { %52 = shalt.err (!%p49_p2)
}
   0x8   :  { %s53_s15 = scalar_lea.vmem %s15_s7, 128  ;;  %p58_p4 = scmp.lt.s32.totalorder %s15_s7, %s15_s7 }
   0x9   :  { %p54_p3 = scmp.ne.s32.totalorder %s15_s7, %s53_s15  ;;  %p59_p5 = scmp.lt.s32.totalorder %s53_s15, %s53_s15 }
   0xb   :  { %p60_p6 = por %p59_p5, %p58_p4 }
   0xd   :  { %p61_p7 = pnand %p60_p6, %p54_p3 }
   0xf   :  { %64 = shalt.err (!%p61_p7)
}
  0x10   :  { %17 = dma.hbm_to_vmem [thread:$0]  %s128_s0, 128, %s15_s7, [#allocation3]  }
  0x11   :  { %87 = dma.done.wait [#allocation3], 128  }
  0x12   :  { %88 = vsyncadd [#allocation3], 4294967168  ;;  %v21_v0 = vld [vmem:[#allocation2] sm:$0xff]  ;;  %s92_s18 = smov 1   ;;  %s93_s19 = smov [#allocation5]  }
  0x13   :  { %22 = vrot.lane.b32.xlu0 %v21_v0, %s92_s18  ;;  %s31_s20 = sshll.u32 %s93_s19, 4  ;;  %s32_s20 = int_to_ptr.vmem [resolvable:$true] %s31_s20 }
  0x14   :  { %s65_s21 = scalar_lea.vmem %s32_s20, 128  ;;  %p70_p9 = scmp.lt.s32.totalorder %s32_s20, %s32_s20 }
  0x15   :  { %p66_p8 = scmp.ne.s32.totalorder %s32_s20, %s65_s21  ;;  %p71_p10 = scmp.lt.s32.totalorder %s65_s21, %s65_s21 }
  0x17   :  { %p72_p11 = por %p71_p10, %p70_p9 }
  0x19   :  { %p73_p12 = pnand %p72_p11, %p66_p8 }
  0x85   :  { %v23_v1 = vpop.permute.xlu0 %22 }
  0x86   :  { %24 = vst [vmem:[#allocation5] sm:$0xff] %v23_v1 }
  0x87   :  { %76 = shalt.err (!%p73_p12)
}
  0x88   :  { %s77_s0 = scalar_lea.hbm %s129_s1, 128 }
  0x89   :  { %p78_p13 = scmp.ne.s32.totalorder %s129_s1, %s77_s0  ;;  %p81_p0 = scmp.lt.u32.totalorder %s77_s0, %s129_s1 }
  0x8b   :  { %p83_p1 = pnand %p81_p0, %p78_p13 }
  0x8d   :  { %86 = shalt.err (!%p83_p1)
}
  0x8e   :  { %34 = dma.vmem_to_hbm [thread:$0]  %s32_s20, 128, %s129_s1, [#allocation4]  }
  0x8f   :  { %89 = dma.done.wait [#allocation4], 128  }
  0x90   :  { %90 = vsyncadd [#allocation4], 4294967168 }
  0x91   :  { %38 = vsyncpa [#allocation3], 1 }
  0x92   :  { %39 = vsyncpa [#allocation4], 1 }

</bundles_post_ra>
